<compile_context>
chip_gen: v7x
topology: tpu7x:2x2x1
jax: 0.10.0
libtpu: 0.0.40
codegen_flags: <defaults>
</compile_context>

<pallas_src>
import math
import jax
import jax.numpy as jnp
from jax.experimental import pallas as pl
from jax.experimental.pallas import tpu as pltpu

# Right-sized scoped-VMEM budget (actual working sets are < 8 MiB; v7x has
# only 64 MiB physical VMEM per TensorCore, default scoped limit 32 MiB).
_VMEM_LIMIT_BYTES = 32 * 1024 * 1024


# ----------------------------------------------------------------------------
# Kernel A: fused 1x1 Conv2d + BatchNorm2d(eval) + ReLU   (k_heatmaps_layer)
# ----------------------------------------------------------------------------
def _conv1x1_bn_relu_kernel(x_ref, w_ref, b_ref, o_ref):
    # x_ref: (1, C, Thw)  bf16 input feature tile (spatial on lanes)
    # w_ref: (K, C)       bf16 BN-folded 1x1 conv weight (resident across grid)
    # b_ref: (K, 1)       f32  BN-folded bias
    # o_ref: (1, K, Thw)  bf16 output heatmap tile
    y = jnp.dot(w_ref[...], x_ref[0], preferred_element_type=jnp.float32)
    o_ref[0] = jnp.maximum(y + b_ref[...], 0.0).astype(o_ref.dtype)


def conv1x1_bn_relu(x, conv_w, conv_b, gamma, beta, run_mean, run_var,
                    eps=1e-5, *, tile_hw=8192, out_dtype=jnp.bfloat16):
    """x: (B, C, H, W); conv_w: (K, C, 1, 1) or (K, C). Returns (B, K, H, W)."""
    B, C, H, W = x.shape
    K = conv_w.shape[0]
    HW = H * W

    # bf16 activation storage (kernel is HBM-bandwidth-bound); f32 accumulate.
    x2 = x.reshape(B, C, HW).astype(jnp.bfloat16)

    # Fold eval-mode BatchNorm into the conv (per output channel scale/shift).
    scale = (gamma / jnp.sqrt(run_var + eps)).astype(jnp.float32)
    w_fold = (scale[:, None]
              * conv_w.reshape(K, C).astype(jnp.float32)).astype(jnp.bfloat16)
    b_fold = (scale * (conv_b.astype(jnp.float32) - run_mean)
              + beta).reshape(K, 1).astype(jnp.float32)

    # Large lane tile, clamped to a multiple of 128; the partial last spatial
    # block is handled by Pallas masking (never fall back to thw = HW).
    thw = min(tile_hw, HW)
    if thw < HW:
        thw = max(128, (thw // 128) * 128)

    grid = (B, pl.cdiv(HW, thw))

    itm = jnp.dtype(jnp.bfloat16).itemsize
    cost = pl.CostEstimate(
        flops=2 * B * K * C * HW + 2 * B * K * HW,
        transcendentals=0,
        bytes_accessed=(B * C * HW + B * K * HW) * itm + K * C * itm + K * 4,
    )

    out = pl.pallas_call(
        _conv1x1_bn_relu_kernel,
        out_shape=jax.ShapeDtypeStruct((B, K, HW), out_dtype),
        grid=grid,
        in_specs=[
            pl.BlockSpec((1, C, thw), lambda b, s: (b, 0, s)),
            pl.BlockSpec((K, C), lambda b, s: (0, 0)),   # resident weights
            pl.BlockSpec((K, 1), lambda b, s: (0, 0)),
        ],
        out_specs=pl.BlockSpec((1, K, thw), lambda b, s: (b, 0, s)),
        compiler_params=pltpu.CompilerParams(
            dimension_semantics=("parallel", "parallel"),
            vmem_limit_bytes=_VMEM_LIMIT_BYTES,
        ),
        cost_estimate=cost,
    )(x2, w_fold, b_fold)
    return out.reshape(B, K, H, W)


# ----------------------------------------------------------------------------
# Kernel B: fused GraphBasisTaskRelevanceLayer + encoding*weight + concat
#           (G axis unrolled inside the body; one grid step per batch tile)
# ----------------------------------------------------------------------------
def _relevance_scale_kernel(enc_ref, w1_ref, b1_ref, w2_ref, b2_ref, out_ref):
    # enc_ref: (G, TB, D)   bf16 basis-encoding row block (one long DMA)
    # w1_ref : (G, D, HID)  bf16 first linear weights (resident)
    # b1_ref : (G, 1, HID)  f32
    # w2_ref : (G, 1, HID)  f32 second linear weight as a row vector
    # b2_ref : (G, 1, 1)    f32
    # out_ref: (TB, G*D)    bf16 slab of the concatenated global embedding
    G = enc_ref.shape[0]
    D = enc_ref.shape[2]
    for g in range(G):                                   # static unroll, G = 7
        e = enc_ref[g]                                                # (TB, D)
        h = jnp.dot(e, w1_ref[g],
                    preferred_element_type=jnp.float32) + b1_ref[g]  # (TB,HID)
        h = jnp.maximum(h, 0.0)
        # Linear(HID, 1): VPU mul + XLU lane-reduce (kernel is DMA-bound, so
        # keeping this off the MXU is fine).
        w = jnp.sum(h * w2_ref[g], axis=-1, keepdims=True) + b2_ref[g]  # (TB,1)
        out_ref[:, g * D:(g + 1) * D] = (
            e.astype(jnp.float32) * w).astype(out_ref.dtype)


def relevance_weighted_concat(encodings, w1s, b1s, w2s, b2s, *, tile_b=512,
                              out_dtype=jnp.bfloat16):
    """encodings: (G, B, D) stacked basis encodings (pp1..ll2).
    w1s: (G, D, HID), b1s: (G, HID), w2s: (G, HID), b2s: (G,).
    Returns the global task embedding (B, G*D)."""
    G, B, D = encodings.shape
    HID = w1s.shape[-1]

    enc = encodings.astype(jnp.bfloat16)
    w1 = w1s.astype(jnp.bfloat16)
    b1 = b1s.reshape(G, 1, HID).astype(jnp.float32)
    w2 = w2s.reshape(G, 1, HID).astype(jnp.float32)
    b2 = b2s.reshape(G, 1, 1).astype(jnp.float32)

    tb = min(tile_b, B)
    if tb < B:
        tb = max(8, (tb // 8) * 8)   # keep sublane block aligned when tiling B

    grid = (pl.cdiv(B, tb),)
    # TODO(synk): at very small B this grid has a single step; on v7x that
    # leaves one of the 2 TensorCores idle (inherent when B < 2 * tb).

    itm = jnp.dtype(jnp.bfloat16).itemsize
    cost = pl.CostEstimate(
        flops=2 * G * B * D * HID + G * B * (3 * HID + D),
        transcendentals=0,
        bytes_accessed=2 * G * B * D * itm + G * D * HID * itm
        + G * (2 * HID + 1) * 4,
    )

    return pl.pallas_call(
        _relevance_scale_kernel,
        out_shape=jax.ShapeDtypeStruct((B, G * D), out_dtype),
        grid=grid,
        in_specs=[
            pl.BlockSpec((G, tb, D), lambda b: (0, b, 0)),
            pl.BlockSpec((G, D, HID), lambda b: (0, 0, 0)),  # resident weights
            pl.BlockSpec((G, 1, HID), lambda b: (0, 0, 0)),
            pl.BlockSpec((G, 1, HID), lambda b: (0, 0, 0)),
            pl.BlockSpec((G, 1, 1), lambda b: (0, 0, 0)),
        ],
        # Lane-dense (tb, G*D) slab: the concat is free and every store is an
        # unmasked vst across all G*D lanes.
        out_specs=pl.BlockSpec((tb, G * D), lambda b: (b, 0)),
        compiler_params=pltpu.CompilerParams(
            dimension_semantics=("parallel",),
            vmem_limit_bytes=_VMEM_LIMIT_BYTES,
        ),
        cost_estimate=cost,
    )(enc, w1, b1, w2, b2)


# ----------------------------------------------------------------------------
# Demo / correctness check
# ----------------------------------------------------------------------------
if __name__ == "__main__":
    key = jax.random.PRNGKey(0)
    keys = jax.random.split(key, 16)

    # ----- k_heatmaps_layer: Conv2d(32 -> 20, 1x1) + BN + ReLU -------------
    B, C_IN, H, W = 2, 32, 16, 16
    K_PTS = 20

    # TODO(synk): _conv_encoder is an external CNN not given in the spec —
    # simulate its output feature map directly.
    feat = jax.random.normal(keys[0], (B, C_IN, H, W), dtype=jnp.float32)

    stdv_c = 1.0 / math.sqrt(C_IN)
    conv_w = jax.random.uniform(keys[1], (K_PTS, C_IN, 1, 1),
                                minval=-stdv_c, maxval=stdv_c,
                                dtype=jnp.float32)
    conv_b = jax.random.uniform(keys[2], (K_PTS,), minval=-stdv_c,
                                maxval=stdv_c, dtype=jnp.float32)
    gamma = 0.5 + jax.random.uniform(keys[3], (K_PTS,), dtype=jnp.float32)
    beta = 0.1 * jax.random.normal(keys[4], (K_PTS,), dtype=jnp.float32)
    run_mean = 0.1 * jax.random.normal(keys[5], (K_PTS,), dtype=jnp.float32)
    run_var = 0.5 + jax.random.uniform(keys[6], (K_PTS,), dtype=jnp.float32)
    eps = 1e-5

    heatmaps = conv1x1_bn_relu(feat, conv_w, conv_b, gamma, beta,
                               run_mean, run_var, eps)
    heatmaps = jax.block_until_ready(heatmaps)

    # Pure-JAX reference for kernel A (using the same bf16-rounded inputs).
    x_bf = feat.reshape(B, C_IN, H * W).astype(jnp.bfloat16).astype(jnp.float32)
    scale = gamma / jnp.sqrt(run_var + eps)
    w_fold = (scale[:, None] * conv_w.reshape(K_PTS, C_IN)
              ).astype(jnp.bfloat16).astype(jnp.float32)
    b_fold = scale * (conv_b - run_mean) + beta
    ref_a = jnp.einsum("kc,bcs->bks", w_fold, x_bf)
    ref_a = jnp.maximum(ref_a + b_fold[None, :, None], 0.0)
    ref_a = ref_a.reshape(B, K_PTS, H, W)
    assert heatmaps.shape == (B, K_PTS, H, W)
    assert bool(jnp.allclose(heatmaps.astype(jnp.float32), ref_a,
                             atol=2e-2, rtol=2e-2))

    # ----- relevance layers + weighting + concat ----------------------------
    # TODO(synk): _vi_key_pointer and the PP/PL/LL GraphBasis GNNs are external
    # modules not given in the spec — simulate the 7 basis encodings directly.
    G, D_OUT, HID = 7, 256, 128
    encodings = jax.random.normal(keys[7], (G, B, D_OUT), dtype=jnp.float32)

    # Shared relevance layers (share_basis_graphs=True): pp, pl, ll -> 7 slots.
    share_idx = jnp.array([0, 0, 0, 1, 1, 2, 2], dtype=jnp.int32)
    stdv1 = 1.0 / math.sqrt(D_OUT)
    stdv2 = 1.0 / math.sqrt(HID)
    w1_base = jax.random.uniform(keys[8], (3, D_OUT, HID),
                                 minval=-stdv1, maxval=stdv1, dtype=jnp.float32)
    b1_base = jax.random.uniform(keys[9], (3, HID),
                                 minval=-stdv1, maxval=stdv1, dtype=jnp.float32)
    w2_base = jax.random.uniform(keys[10], (3, HID),
                                 minval=-stdv2, maxval=stdv2, dtype=jnp.float32)
    b2_base = jax.random.uniform(keys[11], (3,),
                                 minval=-stdv2, maxval=stdv2, dtype=jnp.float32)
    w1s, b1s, w2s, b2s = (w1_base[share_idx], b1_base[share_idx],
                          w2_base[share_idx], b2_base[share_idx])

    global_emb = relevance_weighted_concat(encodings, w1s, b1s, w2s, b2s)
    global_emb = jax.block_until_ready(global_emb)

    # Pure-JAX reference for kernel B (same bf16-rounded encodings/weights).
    enc_bf = encodings.astype(jnp.bfloat16).astype(jnp.float32)
    w1_bf = w1s.astype(jnp.bfloat16).astype(jnp.float32)
    h_ref = jnp.maximum(jnp.einsum("gbd,gdh->gbh", enc_bf, w1_bf)
                        + b1s[:, None, :], 0.0)
    w_ref = jnp.einsum("gbh,gh->gb", h_ref, w2s) + b2s[:, None]      # (G, B)
    scaled = enc_bf * w_ref[:, :, None]                              # (G, B, D)
    ref_b = jnp.transpose(scaled, (1, 0, 2)).reshape(B, G * D_OUT)
    assert global_emb.shape == (B, G * D_OUT)
    assert bool(jnp.allclose(global_emb.astype(jnp.float32), ref_b,
                             atol=2e-2, rtol=2e-2))

    print("KERNEL_OK")
</pallas_src>

<mosaic_0001>
module attributes {stable_mosaic.version = 11 : i64} {
  func.func @_conv1x1_bn_relu_kernel(%arg0: i32, %arg1: i32, %arg2: memref<1x32x256xbf16, #tpu.memory_space<vmem>>, %arg3: memref<20x32xbf16, #tpu.memory_space<vmem>>, %arg4: memref<20x1xf32, #tpu.memory_space<vmem>>, %arg5: memref<1x20x256xbf16, #tpu.memory_space<vmem>>) attributes {dimension_semantics = [#tpu.dimension_semantics<parallel>, #tpu.dimension_semantics<parallel>], iteration_bounds = array<i64: 2, 1>, scalar_prefetch = 0 : i64, scratch_operands = 0 : i64, tpu.core_type = #tpu.core_type<tc>, window_params = [{transform_indices = @transform_0, window_bounds = array<i64: 1, 32, 256>}, {pipeline_mode = #tpu.pipeline_mode<synchronous>, transform_indices = @transform_1, window_bounds = array<i64: 20, 32>}, {pipeline_mode = #tpu.pipeline_mode<synchronous>, transform_indices = @transform_2, window_bounds = array<i64: 20, 1>}, {transform_indices = @transform_3, window_bounds = array<i64: 1, 20, 256>}]} {
    %c0 = arith.constant 0 : index
    %c0_0 = arith.constant 0 : index
    %0 = vector.load %arg3[%c0, %c0_0] : memref<20x32xbf16, #tpu.memory_space<vmem>>, vector<20x32xbf16>
    %c0_1 = arith.constant 0 : index
    %c0_2 = arith.constant 0 : index
    %c0_3 = arith.constant 0 : index
    %1 = vector.load %arg2[%c0_1, %c0_2, %c0_3] : memref<1x32x256xbf16, #tpu.memory_space<vmem>>, vector<1x32x256xbf16>
    %2 = vector.shape_cast %1 : vector<1x32x256xbf16> to vector<32x256xbf16>
    %cst = arith.constant dense<0.000000e+00> : vector<20x256xf32>
    %3 = tpu.matmul %0, %2, %cst {dimension_numbers = #tpu.dot_dimension_numbers<[1], [0], [0], [1], [0, 0, 1, 1], [], []>} : vector<20x32xbf16>, vector<32x256xbf16>, vector<20x256xf32> -> vector<20x256xf32>
    %c0_4 = arith.constant 0 : index
    %c0_5 = arith.constant 0 : index
    %4 = vector.load %arg4[%c0_4, %c0_5] : memref<20x1xf32, #tpu.memory_space<vmem>>, vector<20x1xf32>
    %5 = vector.broadcast %4 : vector<20x1xf32> to vector<20x256xf32>
    %6 = arith.addf %3, %5 : vector<20x256xf32>
    %cst_6 = arith.constant 0.000000e+00 : f32
    %7 = vector.broadcast %cst_6 : f32 to vector<20x256xf32>
    %8 = arith.maximumf %6, %7 : vector<20x256xf32>
    %9 = arith.truncf %8 : vector<20x256xf32> to vector<20x256xbf16>
    %c0_7 = arith.constant 0 : index
    %c0_8 = arith.constant 0 : index
    %c0_9 = arith.constant 0 : index
    %10 = vector.load %arg5[%c0_7, %c0_8, %c0_9] : memref<1x20x256xbf16, #tpu.memory_space<vmem>>, vector<1x20x256xbf16>
    %11 = vector.shape_cast %10 : vector<1x20x256xbf16> to vector<20x256xbf16>
    %12 = vector.shape_cast %9 : vector<20x256xbf16> to vector<1x20x256xbf16>
    tpu.vector_store %arg5[%c0_7, %c0_8, %c0_9], %12 {strides = array<i32>} : memref<1x20x256xbf16, #tpu.memory_space<vmem>>, vector<1x20x256xbf16>,
    return
  }
  func.func @transform_0(%arg0: i32, %arg1: i32) -> (i32, i32, i32) {
    %c0_i32 = arith.constant 0 : i32
    %c0_i32_0 = arith.constant 0 : i32
    return %arg0, %c0_i32, %arg1 : i32, i32, i32
  }
  func.func @transform_1(%arg0: i32, %arg1: i32) -> (i32, i32) {
    %c0_i32 = arith.constant 0 : i32
    %c0_i32_0 = arith.constant 0 : i32
    %c0_i32_1 = arith.constant 0 : i32
    return %c0_i32, %c0_i32_0 : i32, i32
  }
  func.func @transform_2(%arg0: i32, %arg1: i32) -> (i32, i32) {
    %c0_i32 = arith.constant 0 : i32
    %c0_i32_0 = arith.constant 0 : i32
    %c0_i32_1 = arith.constant 0 : i32
    return %c0_i32, %c0_i32_0 : i32, i32
  }
  func.func @transform_3(%arg0: i32, %arg1: i32) -> (i32, i32, i32) {
    %c0_i32 = arith.constant 0 : i32
    %c0_i32_0 = arith.constant 0 : i32
    return %arg0, %c0_i32, %arg1 : i32, i32, i32
  }
}

</mosaic_0001>

<bundles_post_ra>
// kernel: tpu_custom_call.1
= control target key start
LH: loop header
LB: loop body
LE: loop exit
PB: predicated region body
PF: predicated region fallthrough
CT: control target
= control target key end

     0   :  { %8 = vsyncpa [#allocation3], 0  ;;  %s800_s0 = inlined_call_operand.hbm [shape: bf16[2,32,256], index: 0, kind: input, shape index: {}]   ;;  %s801_s1 = inlined_call_operand.vmem [shape: bf16[20,32], index: 1, kind: input, shape index: {}]   ;;  %s802_s2 = inlined_call_operand.vmem [shape: f32[20,1], index: 2, kind: input, shape index: {}]   ;;  %s803_s3 = inlined_call_operand.vmem [shape: bf16[2,20,256], index: 3, kind: output, shape index: {}]  }
   0x1   :  { %10 = vsyncpa [#allocation3 + $0x1], 0  ;;  %s661_s12 = smov 0   ;;  %s663_s13 = smov 0  }
   0x2   :  { %s665_s14 = smov 0   ;;  %s667_s15 = smov 0  }
   0x3   :  { %s669_s16 = smov 0   ;;  %s671_s17 = smov 0  }
   0x4 LB: > { %s455_s18 = sadd.s32 4294967295, %s635_s17   ;;  %s28_s19 = sadd.s32 1, %s631_s16  ;;  %s635_s17 = sphi %s671_s17, %s16_s17   ;;  %s631_s16 = sphi %s669_s16, %s811_s16   ;;  %s627_s15 = sphi %s667_s15, %s810_s15   ;;  %s623_s14 = sphi %s665_s14, %s809_s14   ;;  %s619_s13 = sphi %s663_s13, %s808_s13   ;;  %s615_s12 = sphi %s661_s12, %s807_s12  }
   0x5   : > { %p30_p0 = scmp.ge.s32.totalorder %s28_s19, 2  ;;  %s37_s20 = sadd.s32 1, %s623_s14 }
   0x6   : > { %p44_p1 = scmp.ne.s32.totalorder %s623_s14, %s619_s13  ;;  %p45_p2 = scmp.eq.s32.totalorder %s635_s17, 0 }
   0x7   : > { %s813_s19 = smov (%p30_p0, %s28_s19), 0  ;;  %p50_p4 = scmp.ne.s32.totalorder %s619_s13, %s615_s12 }
   0x8   : > { %p697_p3 = por %p45_p2, %p44_p1  ;;  %s32_s22 = ssub.s32 %s631_s16, %s813_s19 }
   0x9   : > { %p51_p5 = scmp.eq.s32.totalorder %s455_s18, 0  ;;  %p35_p6 = scmp.eq.s32.totalorder %s32_s22, 0 }
   0xa   : > { %p493_p8 = scmp.lt.s32.totalorder %s635_s17, 2  ;;  %s150_s25 = sand.u32 1, %s623_s14  }
   0xb   : > { %p704_p7 = por %p51_p5, %p50_p4  ;;  %s478_s26 = sshll.u32 %s631_s16, 9 }
   0xc   : > { %s710_s24 = scalar_select %p35_p6, %s623_s14, %s37_s20  }
   0xd   : > { %s459_s27 = sshll.u32 %s150_s25, 5  ;;  %s717_s30 = scalar_lea.hbm %s800_s0, %s478_s26 }
   0xe   : > { %s154_s4 = scalar_lea.vmem [#allocation2], %s459_s27  ;;  %p721_p9 = pnand %p493_p8, %p697_p3 }
   0xf   : > { %s163_s5 = sshll.u32 %s154_s4, 4  ;;  %s727_s7 = scalar_lea.sflag [#allocation3], %s150_s25  ;;  %s725_s5 = int_to_ptr.vmem [resolvable:$true] %s163_s5 }
  0x10   : > { %s555_s8 = scalar_lea.hbm %s717_s30, 512  ;;  %p557_p11 = pneg %p721_p9 }
  0x11   : > { %p556_p10 = scmp.ne.s32.totalorder %s717_s30, %s555_s8  ;;  %s560_s11 = scalar_lea.hbm %s800_s0, 1024 }
  0x12   : > { %p561_p0 = scmp.lt.u32.totalorder %s717_s30, %s800_s0  ;;  %p562_p1 = scmp.lt.u32.totalorder %s560_s11, %s555_s8 }
  0x13   : > { %p558_p12 = pnand %p557_p11, %p556_p10  ;;  %p564_p3 = scmp.lt.u32.totalorder %s555_s8, %s717_s30 }
  0x14   : > { %p563_p2 = por %p562_p1, %p561_p0 }
  0x15   : > { %p559_p13 = pneg %p558_p12 }
  0x16   : > { %p565_p4 = por %p564_p3, %p563_p2 }
  0x18   : > { %p566_p5 = pnand %p565_p4, %p559_p13 }
  0x1a   : > { %569 = shalt.err (!%p566_p5)
}
  0x1b   : > { %s570_s20 = scalar_lea.vmem %s725_s5, 512  ;;  %s637_s21 = smov [#allocation2]  }
  0x1c   : > { %p571_p6 = scmp.ne.s32.totalorder %s725_s5, %s570_s20  ;;  %s575_s22 = sshll.u32 %s637_s21, 4  ;;  %s576_s22 = int_to_ptr.vmem [resolvable:$false] %s575_s22 }
  0x1d   : > { %s577_s25 = scalar_lea.vmem %s576_s22, 1024  ;;  %p578_p12 = scmp.lt.s32.totalorder %s725_s5, %s576_s22 }
  0x1e   : > { %p573_p8 = pnand %p571_p6, %p557_p11  ;;  %p579_p0 = scmp.lt.s32.totalorder %s577_s25, %s570_s20 }
  0x20   : > { %p574_p10 = pneg %p573_p8  ;;  %p580_p1 = por %p579_p0, %p578_p12 }
  0x22   : > { %p581_p2 = pnand %p580_p1, %p574_p10 }
  0x24   : > { %584 = shalt.err (!%p581_p2)
}
  0x25   : > { %s638_s26 = smov 128   ;;  %s639_s27 = smov 8  }
  0x26   : > { %492 = dma.hbm_to_vmem [thread:$0]  (!%p721_p9), %s717_s30, 512, %s725_s5, %s727_s7, %s638_s26, %s638_s26, %s639_s27  }
  0x27   : > { %p462_p11 = scmp.ge.s32.totalorder %s635_s17, 1  ;;  %p171_p13 = scmp.lt.s32.totalorder %s635_s17, 3 }
  0x29   : > { %p172_p3 = pnand %p462_p11, %p171_p13 }
  0x2a   : > { %s177_s28 = sand.u32 (!%p172_p3), 1, %s619_s13  }
  0x2b   : > { %175 = sbr.rel (%p172_p3) target bundleno = 284 (0x11c), region = 32  ;;  %s463_s29 = sshll.u32 (!%p172_p3), %s177_s28, 5 }
  0x2c   : > { %s178_s4 = scalar_lea.sflag (!%p172_p3), [#allocation3], %s177_s28  ;;  %s181_s8 = scalar_lea.vmem (!%p172_p3), [#allocation2], %s463_s29 }
  0x32   : > { %610 = dma.done.wait (%p704_p7), %s178_s4, 512  }
  0x33   : > { %612 = vsyncadd (%p704_p7), %s178_s4, 4294966784  ;;  %v640_v0 = vmov 0   ;;  %v547_v1 = vld [vmem:[%s181_s8 + $0x4] ss:$8 sps:$4 sm:$0xff]   ;;  %v549_v2 = vld [vmem:[%s181_s8] ss:$8 sps:$4 sm:$0xff]  }
  0x34   : > { %312 = vmatprep.mubr.bf16.mxu0 %v640_v0  ;;  %322 = vmatprep.mubr.bf16.mxu1 %v640_v0  ;;  %v550_v3 = vld [vmem:[%s181_s8 + $0x14] ss:$8 sps:$4 sm:$0xff]   ;;  %v552_v4 = vld [vmem:[%s181_s8 + $0x10] ss:$8 sps:$4 sm:$0xff]   ;;  %v227_v5 = vld [vmem:[%s802_s2] sm:$0xff]  ;;  %vm273_vm0 = vcmask 261120  }
  0x35   : > { %545 = vset.pattern.permute.xlu0 %v640_v0  ;;  %546 = vset.pattern.permute.xlu1 %v640_v0  ;;  %v229_v6 = vld [vmem:[%s802_s2 + $0x10] sm:$0xf]  ;;  %v553_v7 = vld [vmem:[%s801_s1] sm:$0xff]   ;;  %v554_v8 = vld [vmem:[%s801_s1 + $0x8] ss:$0 sps:$4 sm:$0x33]  }
  0x36   : > { %280 = vmatprep.subr.bf16.mxu0 %v547_v1  ;;  %482 = vmatprep.subr.bf16.mxu1 %v547_v1  ;;  %v228_v9 = vld [vmem:[%s802_s2 + $0x8] sm:$0xff]  ;;  %p210_p7 = scmp.lt.s32.totalorder %s627_s15, 1 }
  0x37   : > { %281 = vmatpush1.bf16.msra.mxu0 %v549_v2  ;;  %484 = vmatpush1.bf16.msra.mxu1 %v549_v2 }
  0x38   : > { %282 = vmatprep.subr.bf16.mxu0 %v550_v3  ;;  %483 = vmatprep.subr.bf16.mxu1 %v550_v3  ;;  %s815_s15 = smov (!%p210_p7, %s627_s15), 1 }
  0x39   : > { %232 = vperm.xlu0 %545, %v227_v5   ;;  %242 = vperm.xlu1 %546, %v229_v6   ;;  %s486_s20 = smul.u32 24, %s815_s15 }
  0x3b   : > { %283 = vmatpush1.bf16.msra.mxu0 %v552_v4  ;;  %485 = vmatpush1.bf16.msra.mxu1 %v552_v4  ;;  %s217_s25 = scalar_lea.vmem %s803_s3, %s486_s20 }
  0x3d   : > { %237 = vperm.xlu0 %545, %v228_v9  }
  0x3e   : > { %471 = vmatmul.mubr.msk.bf16.vlgmr.msra.gmra.mrb[0].mxu0 %vm273_vm0, %v553_v7  ;;  %472 = vmatmul.mubr.msk.bf16.vlgmr.msra.gmra.mrb[0].mxu1 %vm273_vm0, %v554_v8 }
  0xb8   : > { %v233_v10 = vpop.permute.xlu0 %232  ;;  %v243_v11 = vpop.permute.xlu1 %242 }
  0xbc   : > { %v238_v12 = vpop.permute.xlu0 %237 }
 0x111   : > { %v314_v13 = vpop.f32.mrb[0].mxu0  ;;  %v324_v14 = vpop.f32.mrb[0].mxu1 }
 0x112   : > { %v315_v15 = vadd.f32 %v314_v13, %v233_v10  ;;  %v316_v16 = vpop.f32.mrb[1].mxu0  ;;  %v326_v17 = vpop.f32.mrb[1].mxu1  ;;  %v325_v18 = vadd.f32 %v324_v14, %v243_v11 }
 0x113   : > { %v317_v19 = vadd.f32 %v316_v16, %v233_v10  ;;  %v327_v20 = vadd.f32 %v326_v17, %v243_v11  ;;  %v318_v21 = vpop.f32.mrb[2].mxu0  ;;  %v328_v22 = vpop.f32.mrb[2].mxu1 }
 0x114   : > { %v331_v23 = vmax.f32 %v315_v15, 0.0  ;;  %v335_v24 = vmax.f32 %v325_v18, 0.0  ;;  %v319_v25 = vadd.f32 %v318_v21, %v238_v12  ;;  %v320_v26 = vpop.f32.mrb[3].mxu0  ;;  %v329_v27 = vpop.f32.mrb[3].mxu1 }
 0x115   : > { %v332_v28 = vmax.f32 %v317_v19, 0.0  ;;  %v336_v29 = vmax.f32 %v327_v20, 0.0  ;;  %v321_v30 = vadd.f32 %v320_v26, %v238_v12 }
 0x116   : > { %v333_v31 = vmax.f32 %v319_v25, 0.0 }
 0x117   : > { %v479_v32 = vpack.c.bf16 %v332_v28, %v331_v23  ;;  %v481_v33 = vpack.c.bf16 %v336_v29, %v335_v24  ;;  %v334_v34 = vmax.f32 %v321_v30, 0.0 }
 0x119   : > { %357 = vst [vmem:[%s217_s25] sm:$0xff] %v479_v32  ;;  %359 = vst [vmem:[%s217_s25 + $0x10] sm:$0x33] %v481_v33  ;;  %v480_v35 = vpack.c.bf16 %v334_v34, %v333_v31 }
 0x11b   : > { %358 = vst [vmem:[%s217_s25 + $0x8] sm:$0xff] %v480_v35 }
 0x11c PF: > { %s16_s17 = sadd.s32 1, %s635_s17   ;;  %s807_s12 = smov %s619_s13 }
 0x11d   : > { %p13_p9 = scmp.ge.s32.totalorder %s16_s17, 4   ;;  %s808_s13 = smov %s623_s14 }
 0x11e   : > { %s809_s14 = smov %s710_s24  ;;  %s810_s15 = smov %s631_s16 }
 0x11f   : > { %s811_s16 = smov %s813_s19  ;;  %15 = sbr.rel (!%p13_p9) target bundleno = 4 (0x4), region = 72 }
 0x126   :  { %390 = vsyncpa [#allocation3], 1 }
 0x127   :  { %392 = vsyncpa [#allocation3 + $0x1], 1 }

</bundles_post_ra>
